<compile_context>
chip_gen: v7x
topology: tpu7x:2x2x1
jax: 0.10.0
libtpu: 0.0.40
codegen_flags: <defaults>
</compile_context>

<pallas_src>
import jax
import jax.numpy as jnp
from jax.experimental import pallas as pl
from jax.experimental.pallas import tpu as pltpu


def q_mlp_kernel(xt_ref, w1t_ref, b1_ref, w2t_ref, b2_ref, w3c_ref, b3_ref,
                 o_ref):
    # Layer 1: h1^T = W1^T @ X^T -> (16, TB); batch on lanes, f32 accumulation.
    h1 = jnp.dot(w1t_ref[...], xt_ref[...], preferred_element_type=jnp.float32)
    h1 = jnp.maximum(h1 + b1_ref[...], 0.0)                       # ReLU (f32)

    # Layer 2: h2^T = W2^T @ h1^T -> (16, TB).
    h2 = jnp.dot(w2t_ref[...], h1, preferred_element_type=jnp.float32)
    h2 = jnp.maximum(h2 + b2_ref[...], 0.0)                       # ReLU (f32)

    # Layer 3 has N=1: broadcast multiply + sublane reduction instead of a
    # wasted MXU pass. Result is a lane-dense (1, TB) row.
    out = jnp.sum(h2 * w3c_ref[...], axis=0, keepdims=True) + b3_ref[...]
    o_ref[...] = out.astype(o_ref.dtype)


def _choose_tb(B, tb):
    """Pick a lane-legal batch tile (multiple of 128, or the full batch)."""
    tb = max(128, (tb // 128) * 128)
    if B < 256:
        # Too small to split into >=2 lane-legal tiles; single grid step.
        return B
    # Aim for >= 2 grid steps (DMA/compute overlap + v7x megacore sharding).
    half = ((B + 1) // 2 + 127) // 128 * 128
    return min(tb, half)


def q_forward(s0, s1, a0, a1, params, *, tb=4096):
    """Fused Q(s0, s1, a0, a1) forward pass, batch-on-lanes orientation.

    tb: max batch tile width (lanes per grid step, rounded to a multiple of
        128). At 4096 the double-buffered per-step working set is ~1 MiB, well
        inside default scoped VMEM on v5e/v6e/v7x.
    """
    w1, b1, w2, b2, w3, b3 = params
    B, Ds = s0.shape
    Na = a0.shape[1]
    d_in = 2 * Ds + 2 * Na
    H = w1.shape[1]                                   # 16

    # Feature-major activation slab: one fused wrapper pass (concat + transpose).
    # If the caller can provide feature-major activations directly, this extra
    # HBM pass disappears.
    xt = jnp.concatenate([s0, s1, a0, a1], axis=1).T.astype(jnp.float32)  # (d_in, B)

    w1t = w1.T.astype(jnp.float32)                    # (16, d_in) resident
    w2t = w2.T.astype(jnp.float32)                    # (16, 16)   resident
    b1c = b1.reshape(H, 1).astype(jnp.float32)        # (16, 1) column bias
    b2c = b2.reshape(H, 1).astype(jnp.float32)        # (16, 1)
    w3c = w3.astype(jnp.float32)                      # (16, 1) column for VPU reduce
    b3c = b3.reshape(1, 1).astype(jnp.float32)        # (1, 1)

    TB = _choose_tb(B, tb)
    grid = (pl.cdiv(B, TB),)

    def resident(shape):
        # Same block index every grid step -> weights/biases stay in VMEM.
        return pl.BlockSpec(shape, lambda i: (0, 0))

    cost = pl.CostEstimate(
        flops=2 * B * (d_in * H + H * H + H),
        transcendentals=0,
        bytes_accessed=(B * d_in * 4                  # streamed activations
                        + B * 4                       # (1, B) output row
                        + (d_in * H + H * H + 3 * H + 1) * 4),  # resident params
    )

    out_row = pl.pallas_call(
        q_mlp_kernel,
        out_shape=jax.ShapeDtypeStruct((1, B), jnp.float32),
        grid_spec=pltpu.PrefetchScalarGridSpec(
            num_scalar_prefetch=0,
            grid=grid,
            in_specs=[
                pl.BlockSpec((d_in, TB), lambda i: (0, i)),   # streamed X^T tiles
                resident((H, d_in)),                          # W1^T
                resident((H, 1)),                             # b1
                resident((H, H)),                             # W2^T
                resident((H, 1)),                             # b2
                resident((H, 1)),                             # w3 column
                resident((1, 1)),                             # b3
            ],
            out_specs=pl.BlockSpec((1, TB), lambda i: (0, i)),  # lane-dense output
        ),
        compiler_params=pltpu.CompilerParams(
            dimension_semantics=("parallel",),        # megacore-shard batch tiles
            vmem_limit_bytes=32 * 1024 * 1024,
        ),
        cost_estimate=cost,
    )(xt, w1t, b1c, w2t, b2c, w3c, b3c)

    # (1, B) row -> (B, 1) column; same flat element order, so this is cheap.
    return out_row.reshape(B, 1)


def init_params(key, Nx, Ny, Na):
    # Deterministic init mirroring nn.Linear default: U(-1/sqrt(fan_in), +1/sqrt(fan_in)).
    d_in = 2 * Ny * Nx + 2 * Na
    dims = [(d_in, 16), (16, 16), (16, 1)]
    params = []
    for (fin, fout) in dims:
        key, kw, kb = jax.random.split(key, 3)
        bound = 1.0 / jnp.sqrt(fin)
        w = jax.random.uniform(kw, (fin, fout), jnp.float32, -bound, bound)
        b = jax.random.uniform(kb, (1, fout), jnp.float32, -bound, bound)
        params += [w, b]
    return tuple(params)


def q_reference(s0, s1, a0, a1, params):
    w1, b1, w2, b2, w3, b3 = params
    x = jnp.concatenate([s0, s1, a0, a1], axis=1)
    h = jnp.maximum(x @ w1 + b1, 0.0)
    h = jnp.maximum(h @ w2 + b2, 0.0)
    return h @ w3 + b3


if __name__ == "__main__":
    Nx, Ny, Na = 4, 4, 2
    params = init_params(jax.random.PRNGKey(0), Nx, Ny, Na)

    # Test 1: tiny batch (single grid step, lane dim == full batch).
    B = 16
    key = jax.random.PRNGKey(0)
    key, k0, k1, k2, k3 = jax.random.split(key, 5)
    s0 = jax.random.normal(k0, (B, Ny * Nx), jnp.float32)
    s1 = jax.random.normal(k1, (B, Ny * Nx), jnp.float32)
    a0 = jax.random.normal(k2, (B, Na), jnp.float32)
    a1 = jax.random.normal(k3, (B, Na), jnp.float32)

    out = jax.block_until_ready(q_forward(s0, s1, a0, a1, params))
    ref = q_reference(s0, s1, a0, a1, params)
    assert out.shape == (B, 1)
    assert jnp.allclose(out, ref, atol=1e-5, rtol=1e-5)

    # Test 2: multi-step grid with a partial last tile (B=384 -> TB=256, 2 steps).
    B2 = 384
    key, k0, k1, k2, k3 = jax.random.split(key, 5)
    s0b = jax.random.normal(k0, (B2, Ny * Nx), jnp.float32)
    s1b = jax.random.normal(k1, (B2, Ny * Nx), jnp.float32)
    a0b = jax.random.normal(k2, (B2, Na), jnp.float32)
    a1b = jax.random.normal(k3, (B2, Na), jnp.float32)

    out2 = jax.block_until_ready(q_forward(s0b, s1b, a0b, a1b, params))
    ref2 = q_reference(s0b, s1b, a0b, a1b, params)
    assert out2.shape == (B2, 1)
    assert jnp.allclose(out2, ref2, atol=1e-5, rtol=1e-5)

    print("KERNEL_OK")
</pallas_src>

<mosaic_0001>
module attributes {stable_mosaic.version = 11 : i64} {
  func.func @q_mlp_kernel(%arg0: i32, %arg1: memref<36x16xf32, #tpu.memory_space<vmem>>, %arg2: memref<16x36xf32, #tpu.memory_space<vmem>>, %arg3: memref<16x1xf32, #tpu.memory_space<vmem>>, %arg4: memref<16x16xf32, #tpu.memory_space<vmem>>, %arg5: memref<16x1xf32, #tpu.memory_space<vmem>>, %arg6: memref<16x1xf32, #tpu.memory_space<vmem>>, %arg7: memref<1x1xf32, #tpu.memory_space<vmem>>, %arg8: memref<1x16xf32, #tpu.memory_space<vmem>>) attributes {dimension_semantics = [#tpu.dimension_semantics<parallel>], iteration_bounds = array<i64: 1>, scalar_prefetch = 0 : i64, scratch_operands = 0 : i64, tpu.core_type = #tpu.core_type<tc>, window_params = [{transform_indices = @transform_0, window_bounds = array<i64: 36, 16>}, {pipeline_mode = #tpu.pipeline_mode<synchronous>, transform_indices = @transform_1, window_bounds = array<i64: 16, 36>}, {pipeline_mode = #tpu.pipeline_mode<synchronous>, transform_indices = @transform_2, window_bounds = array<i64: 16, 1>}, {pipeline_mode = #tpu.pipeline_mode<synchronous>, transform_indices = @transform_3, window_bounds = array<i64: 16, 16>}, {pipeline_mode = #tpu.pipeline_mode<synchronous>, transform_indices = @transform_4, window_bounds = array<i64: 16, 1>}, {pipeline_mode = #tpu.pipeline_mode<synchronous>, transform_indices = @transform_5, window_bounds = array<i64: 16, 1>}, {pipeline_mode = #tpu.pipeline_mode<synchronous>, transform_indices = @transform_6, window_bounds = array<i64: 1, 1>}, {transform_indices = @transform_7, window_bounds = array<i64: 1, 16>}]} {
    %c0 = arith.constant 0 : index
    %c0_0 = arith.constant 0 : index
    %0 = vector.load %arg2[%c0, %c0_0] : memref<16x36xf32, #tpu.memory_space<vmem>>, vector<16x36xf32>
    %c0_1 = arith.constant 0 : index
    %c0_2 = arith.constant 0 : index
    %1 = vector.load %arg1[%c0_1, %c0_2] : memref<36x16xf32, #tpu.memory_space<vmem>>, vector<36x16xf32>
    %cst = arith.constant dense<0.000000e+00> : vector<16x16xf32>
    %2 = tpu.matmul %0, %1, %cst {dimension_numbers = #tpu.dot_dimension_numbers<[1], [0], [0], [1], [0, 0, 1, 1], [], []>} : vector<16x36xf32>, vector<36x16xf32>, vector<16x16xf32> -> vector<16x16xf32>
    %c0_3 = arith.constant 0 : index
    %c0_4 = arith.constant 0 : index
    %3 = vector.load %arg3[%c0_3, %c0_4] : memref<16x1xf32, #tpu.memory_space<vmem>>, vector<16x1xf32>
    %4 = vector.broadcast %3 : vector<16x1xf32> to vector<16x16xf32>
    %5 = arith.addf %2, %4 : vector<16x16xf32>
    %cst_5 = arith.constant 0.000000e+00 : f32
    %6 = vector.broadcast %cst_5 : f32 to vector<16x16xf32>
    %7 = arith.maximumf %5, %6 : vector<16x16xf32>
    %c0_6 = arith.constant 0 : index
    %c0_7 = arith.constant 0 : index
    %8 = vector.load %arg4[%c0_6, %c0_7] : memref<16x16xf32, #tpu.memory_space<vmem>>, vector<16x16xf32>
    %cst_8 = arith.constant dense<0.000000e+00> : vector<16x16xf32>
    %9 = tpu.matmul %8, %7, %cst_8 {dimension_numbers = #tpu.dot_dimension_numbers<[1], [0], [0], [1], [0, 0, 1, 1], [], []>} : vector<16x16xf32>, vector<16x16xf32>, vector<16x16xf32> -> vector<16x16xf32>
    %c0_9 = arith.constant 0 : index
    %c0_10 = arith.constant 0 : index
    %10 = vector.load %arg5[%c0_9, %c0_10] : memref<16x1xf32, #tpu.memory_space<vmem>>, vector<16x1xf32>
    %11 = vector.broadcast %10 : vector<16x1xf32> to vector<16x16xf32>
    %12 = arith.addf %9, %11 : vector<16x16xf32>
    %cst_11 = arith.constant 0.000000e+00 : f32
    %13 = vector.broadcast %cst_11 : f32 to vector<16x16xf32>
    %14 = arith.maximumf %12, %13 : vector<16x16xf32>
    %c0_12 = arith.constant 0 : index
    %c0_13 = arith.constant 0 : index
    %15 = vector.load %arg6[%c0_12, %c0_13] : memref<16x1xf32, #tpu.memory_space<vmem>>, vector<16x1xf32>
    %16 = vector.broadcast %15 : vector<16x1xf32> to vector<16x16xf32>
    %17 = arith.mulf %14, %16 : vector<16x16xf32>
    %cst_14 = arith.constant dense<0.000000e+00> : vector<16xf32>
    %18 = vector.multi_reduction <add>, %17, %cst_14 [0] : vector<16x16xf32> to vector<16xf32>
    %19 = vector.shape_cast %18 : vector<16xf32> to vector<1x16xf32>
    %c0_15 = arith.constant 0 : index
    %c0_16 = arith.constant 0 : index
    %20 = vector.load %arg7[%c0_15, %c0_16] : memref<1x1xf32, #tpu.memory_space<vmem>>, vector<1x1xf32>
    %21 = vector.broadcast %20 : vector<1x1xf32> to vector<1x16xf32>
    %22 = arith.addf %19, %21 : vector<1x16xf32>
    %c0_17 = arith.constant 0 : index
    %c0_18 = arith.constant 0 : index
    %23 = vector.load %arg8[%c0_17, %c0_18] : memref<1x16xf32, #tpu.memory_space<vmem>>, vector<1x16xf32>
    tpu.vector_store %arg8[%c0_17, %c0_18], %22 {strides = array<i32>} : memref<1x16xf32, #tpu.memory_space<vmem>>, vector<1x16xf32>,
    return
  }
  func.func @transform_0(%arg0: i32) -> (i32, i32) {
    %c0_i32 = arith.constant 0 : i32
    %c0_i32_0 = arith.constant 0 : i32
    return %c0_i32, %arg0 : i32, i32
  }
  func.func @transform_1(%arg0: i32) -> (i32, i32) {
    %c0_i32 = arith.constant 0 : i32
    %c0_i32_0 = arith.constant 0 : i32
    %c0_i32_1 = arith.constant 0 : i32
    return %c0_i32, %c0_i32_0 : i32, i32
  }
  func.func @transform_2(%arg0: i32) -> (i32, i32) {
    %c0_i32 = arith.constant 0 : i32
    %c0_i32_0 = arith.constant 0 : i32
    %c0_i32_1 = arith.constant 0 : i32
    return %c0_i32, %c0_i32_0 : i32, i32
  }
  func.func @transform_3(%arg0: i32) -> (i32, i32) {
    %c0_i32 = arith.constant 0 : i32
    %c0_i32_0 = arith.constant 0 : i32
    %c0_i32_1 = arith.constant 0 : i32
    return %c0_i32, %c0_i32_0 : i32, i32
  }
  func.func @transform_4(%arg0: i32) -> (i32, i32) {
    %c0_i32 = arith.constant 0 : i32
    %c0_i32_0 = arith.constant 0 : i32
    %c0_i32_1 = arith.constant 0 : i32
    return %c0_i32, %c0_i32_0 : i32, i32
  }
  func.func @transform_5(%arg0: i32) -> (i32, i32) {
    %c0_i32 = arith.constant 0 : i32
    %c0_i32_0 = arith.constant 0 : i32
    %c0_i32_1 = arith.constant 0 : i32
    return %c0_i32, %c0_i32_0 : i32, i32
  }
  func.func @transform_6(%arg0: i32) -> (i32, i32) {
    %c0_i32 = arith.constant 0 : i32
    %c0_i32_0 = arith.constant 0 : i32
    %c0_i32_1 = arith.constant 0 : i32
    return %c0_i32, %c0_i32_0 : i32, i32
  }
  func.func @transform_7(%arg0: i32) -> (i32, i32) {
    %c0_i32 = arith.constant 0 : i32
    %c0_i32_0 = arith.constant 0 : i32
    return %c0_i32, %arg0 : i32, i32
  }
}

</mosaic_0001>

<bundles_post_ra>
// kernel: tpu_custom_call.1
= control target key start
LH: loop header
LB: loop body
LE: loop exit
PB: predicated region body
PF: predicated region fallthrough
CT: control target
= control target key end

     0   :  { %s468_s0 = inlined_call_operand.vmem [shape: f32[36,16], index: 0, kind: input, shape index: {}]   ;;  %s469_s1 = inlined_call_operand.vmem [shape: f32[16,36], index: 1, kind: input, shape index: {}]   ;;  %s470_s2 = inlined_call_operand.vmem [shape: f32[16,1], index: 2, kind: input, shape index: {}]   ;;  %s471_s3 = inlined_call_operand.vmem [shape: f32[16,16], index: 3, kind: input, shape index: {}]   ;;  %s472_s4 = inlined_call_operand.vmem [shape: f32[16,1], index: 4, kind: input, shape index: {}]   ;;  %s473_s5 = inlined_call_operand.vmem [shape: f32[16,1], index: 5, kind: input, shape index: {}]   ;;  %s474_s6 = inlined_call_operand.<no memory space> [shape: f32[1,1], index: 6, kind: input, shape index: {}]   ;;  %s475_s7 = inlined_call_operand.hbm [shape: f32[1,16], index: 7, kind: output, shape index: {}]  }
   0x1   :  { %v12_v0 = vstv %s474_s6 }
   0x2   :  { %13 = vst [vmem:[#allocation2] sm:$0x1] %v12_v0 }
   0x3   :  { %v31_v1 = vld [vmem:[%s468_s0] sm:$0xff]  ;;  %v32_v2 = vld [vmem:[%s468_s0 + $0x8] sm:$0xff]  ;;  %v33_v3 = vld [vmem:[%s468_s0 + $0x10] sm:$0xff]  ;;  %vm48_vm0 = vcmask 293888   ;;  %v360_v7 = vmov 0  }
   0x4   :  { %v320_v4 = vpack.c.bf16 %v32_v2, %v31_v1  ;;  %v34_v5 = vld [vmem:[%s468_s0 + $0x18] sm:$0xff]  ;;  %v29_v6 = vld [vmem:[%s469_s1] sm:$0xff]  ;;  %334 = vset.pattern.permute.xlu0 %v360_v7  ;;  %335 = vset.pattern.permute.xlu1 %v360_v7 }
   0x5   :  { %v324_v8 = vpack.c.bf16 %v34_v5, %v33_v3  ;;  %310 = vmatprep.mubr.msk.f32.mxu0 %vm48_vm0, %v29_v6  ;;  %v36_v9 = vld [vmem:[%s470_s2] sm:$0xff] }
   0x6   :  { %321 = vmatprep.subr.bf16.mxu0 %v320_v4  ;;  %40 = vperm.xlu0 %334, %v36_v9  }
   0x7   :  { %14 = vsyncpa [#allocation4], 0  ;;  %323 = vmatpush3.bf16.msra.mxu0 %v320_v4  ;;  %v37_v10 = vld [vmem:[%s470_s2 + $0x8] sm:$0xff]  ;;  %v35_v11 = vld [vmem:[%s468_s0 + $0x20] sm:$0xf]  ;;  %vm55_vm1 = vcmask 1043456   ;;  %v263_v43 = vlaneseq }
   0x8   :  { %325 = vmatprep.subr.bf16.mxu0 %v324_v8  ;;  %v234_v12 = vld [vmem:[%s473_s5] sm:$0xff]  ;;  %v30_v13 = vld [vmem:[%s469_s1 + $0x8] sm:$0xff]  ;;  %vm150_vm2 = vcmask 130048   ;;  %vm268_vm3 = vcmask 122880  }
   0x9   :  { %v257_v14 = vld [vmem:[#allocation2] sm:$0x1]  ;;  %v139_v17 = vld [vmem:[%s472_s4 + $0x8] sm:$0xff]  ;;  %v264_v46 = vshrl.u32 %v263_v43, 7 }
   0xa   :  { %45 = vperm.xlu0 %334, %v37_v10   ;;  %v136_v15 = vld [vmem:[%s471_s3] sm:$0xff]  ;;  %v235_v18 = vld [vmem:[%s473_s5 + $0x8] sm:$0xff] }
   0xb   :  { %327 = vmatpush3.bf16.msra.mxu0 %v324_v8  ;;  %317 = vmatprep.mubr.msk.f32.mxu1 %vm150_vm2, %v136_v15  ;;  %v138_v16 = vld [vmem:[%s472_s4] sm:$0xff]  ;;  %v137_v28 = vld [vmem:[%s471_s3 + $0x8] sm:$0xff]  ;;  %v265_v49 = vsub.s32 0, %v264_v46  ;;  %s361_s3 = smov [#allocation3]  }
   0xc   :  { %308 = vmatprep.subr.msk.mxu0 %vm55_vm1, %v35_v11  ;;  %142 = vperm.xlu1 %335, %v138_v16   ;;  %s276_s4 = sshll.u32 %s361_s3, 4  ;;  %s277_s4 = int_to_ptr.vmem [resolvable:$true] %s276_s4 }
   0xd   :  { %s336_s5 = scalar_lea.vmem %s277_s4, 16  ;;  %s340_s29 = scalar_lea.vmem %s277_s4, 32 }
   0xe   :  { %238 = vperm.xlu0 %334, %v234_v12   ;;  %p337_p0 = scmp.ne.s32.totalorder %s277_s4, %s336_s5  ;;  %p341_p1 = scmp.lt.s32.totalorder %s277_s4, %s277_s4 }
   0xf   :  { %309 = vmatpush3.msk.msra.mxu0 %vm55_vm1, %v35_v11  ;;  %p342_p2 = scmp.lt.s32.totalorder %s340_s29, %s336_s5 }
  0x10   :  { %311 = vmatmul.mubr.msk.f32.vlgmr.msra.gmra.mrb[0].mxu0 %vm48_vm0, %v30_v13  ;;  %147 = vperm.xlu1 %335, %v139_v17  }
  0x11   :  { %p343_p3 = por %p342_p2, %p341_p1 }
  0x12   :  { %260 = vperm.xlu0 %334, %v257_v14  }
  0x13   :  { %p344_p4 = pnand %p343_p3, %p337_p0 }
  0x14   :  { %243 = vperm.xlu1 %335, %v235_v18  }
  0x85   :  { %v41_v19 = vpop.permute.xlu0 %40 }
  0x89   :  { %v46_v20 = vpop.permute.xlu0 %45 }
  0x8b   :  { %v143_v29 = vpop.permute.xlu1 %142 }
  0x8d   :  { %v239_v38 = vpop.permute.xlu0 %238 }
  0x8f   :  { %v148_v30 = vpop.permute.xlu1 %147 }
  0x91   :  { %v261_v51 = vpop.permute.xlu0 %260 }
  0x92   :  { %v266_v53 = vrot.slane %v261_v51, %v265_v49 }
  0x93   :  { %v244_v36 = vpop.permute.xlu1 %243 }
  0xe3   :  { %v312_v21 = vpop.f32.mrb[0].mxu0 }
  0xe4   :  { %v131_v22 = vadd.f32 %v312_v21, %v46_v20  ;;  %v125_v23 = vpop.f32.mrb[1].mxu0 }
  0xe5   :  { %v126_v24 = vadd.f32 %v125_v23, %v41_v19 }
  0xe6   :  { %v135_v25 = vmax.f32 %v131_v22, 0.0 }
  0xe7   :  { %v134_v26 = vmax.f32 %v126_v24, 0.0 }
  0xe9   :  { %v328_v27 = vpack.c.bf16 %v135_v25, %v134_v26 }
  0xeb   :  { %329 = vmatprep.subr.bf16.mxu1 %v328_v27 }
  0xec   :  { %331 = vmatpush3.bf16.msra.mxu1 %v328_v27 }
  0xef   :  { %318 = vmatmul.mubr.msk.f32.vlgmr.msra.gmra.mrb[0].mxu1 %vm150_vm2, %v137_v28 }
 0x1c2   :  { %v319_v31 = vpop.f32.mrb[0].mxu1 }
 0x1c3   :  { %v229_v32 = vadd.f32 %v319_v31, %v148_v30  ;;  %v223_v33 = vpop.f32.mrb[1].mxu1 }
 0x1c4   :  { %v224_v34 = vadd.f32 %v223_v33, %v143_v29 }
 0x1c5   :  { %v233_v35 = vmax.f32 %v229_v32, 0.0 }
 0x1c6   :  { %v232_v37 = vmax.f32 %v224_v34, 0.0 }
 0x1c7   :  { %v247_v39 = vmul.f32 %v244_v36, %v233_v35 }
 0x1c8   :  { %v246_v40 = vmul.f32 %v239_v38, %v232_v37 }
 0x1c9   :  { %v249_v41 = vsel %vm150_vm2, %v247_v39, 0.0 }
 0x1ca   :  { %v248_v42 = vsel %vm150_vm2, %v246_v40, 0.0 }
 0x1cb   :  { %v250_v44 = vadd.f32 %v249_v41, %v248_v42 }
 0x1cd   :  { %v251_v45 = vrot.slane %v250_v44, 4 }
 0x1cf   :  { %v252_v47 = vadd.f32 %v251_v45, %v250_v44 }
 0x1d1   :  { %v253_v48 = vrot.slane %v252_v47, 2 }
 0x1d3   :  { %v254_v50 = vadd.f32 %v253_v48, %v252_v47 }
 0x1d5   :  { %v255_v52 = vrot.slane %v254_v50, 1 }
 0x1d7   :  { %v256_v54 = vadd.f32 %v255_v52, %v254_v50 }
 0x1d9   :  { %v267_v55 = vadd.f32 %v266_v53, %v256_v54 }
 0x1db   :  { %269 = vst.msk [vmem:[#allocation3] sm:$0x1] %vm268_vm3, %v267_v55 }
 0x1dc   :  { %347 = shalt.err (!%p344_p4)
}
 0x1dd   :  { %s348_s9 = scalar_lea.hbm %s475_s7, 16 }
 0x1de   :  { %p349_p5 = scmp.ne.s32.totalorder %s475_s7, %s348_s9  ;;  %p352_p6 = scmp.lt.u32.totalorder %s348_s9, %s475_s7 }
 0x1e0   :  { %p354_p7 = pnand %p352_p6, %p349_p5 }
 0x1e2   :  { %357 = shalt.err (!%p354_p7)
}
 0x1e3   :  { %279 = dma.vmem_to_hbm [thread:$0]  %s277_s4, 16, %s475_s7, [#allocation4]  }
 0x1e4   :  { %358 = dma.done.wait [#allocation4], 16  }
 0x1e5   :  { %359 = vsyncadd [#allocation4], 4294967280 }
 0x1e6   :  { %283 = vsyncpa [#allocation4], 1 }

</bundles_post_ra>
